<compile_context>
chip_gen: v7x
topology: tpu7x:2x2x1
jax: 0.10.0
libtpu: 0.0.40
codegen_flags: <defaults>
</compile_context>

<pallas_src>
import functools

import numpy as np
import jax
import jax.numpy as jnp
from jax.experimental import pallas as pl
from jax.experimental.pallas import tpu as pltpu


def _make_filters(factor: float):
    """The 4 fixed 3x3 Sobel filters (Gx, Gy, Gxy, Gyx) — reference only."""
    f = float(factor)
    Gx = ((f, 0.0, -f), (2 * f, 0.0, -2 * f), (f, 0.0, -f))
    Gy = ((f, 2 * f, f), (0.0, 0.0, 0.0), (-f, -2 * f, -f))
    Gxy = ((2 * f, f, 0.0), (f, 0.0, -f), (0.0, -f, -2 * f))
    Gyx = ((0.0, f, 2 * f), (-f, 0.0, f), (-2 * f, -f, 0.0))
    return (Gx, Gy, Gxy, Gyx)


def _sobel_kernel(img_ref, out_ref, *, factor, Ho, Wo):
    # img_ref: (TB, H, W)  input dtype (cast to f32 in VMEM)
    # out_ref: (TB, Ho, Wo) normalized edge magnitude
    img = img_ref[...].astype(jnp.float32)

    # --- column (lane) shifts: materialized exactly ONCE each ---------------
    # A minor-dim slice with a non-zero lane start lowers to a
    # lane-rotate+select relayout (same XLU cost as pltpu.roll) and produces a
    # real VMEM copy, so it is done only twice instead of 8x as before.
    col0 = img[:, :, 0:Wo]        # column j   (lane-aligned crop, no relayout)
    col1 = img[:, :, 1:1 + Wo]    # column j+1 (one lane relayout)
    col2 = img[:, :, 2:2 + Wo]    # column j+2 (one lane relayout)

    # Shared horizontal terms at full height (TB, H, Wo), computed once.
    hsum = col0 + col1 + col2     # [1, 1, 1] across columns
    hdiff = col0 - col2           # [1, 0, -1] across columns

    # --- row (sublane) slices of the shared terms; all lane-aligned ---------
    s0 = hsum[:, 0:Ho, :]
    s2 = hsum[:, 2:2 + Ho, :]
    d0 = hdiff[:, 0:Ho, :]
    d1 = hdiff[:, 1:1 + Ho, :]
    d2 = hdiff[:, 2:2 + Ho, :]
    bd = col1[:, 0:Ho, :] - col1[:, 2:2 + Ho, :]    # b0 - b2 (middle column)

    A = s0 - s2                   # Gxy/f = A + B,  Gyx/f = A - B
    B = d0 + d1 + d2
    gx = B + d1                   # Gx/f = d0 + 2*d1 + d2
    gy = A + bd                   # Gy/f = (s0 + b0) - (s2 + b2)

    # (Gxy)^2 + (Gyx)^2 == 2*(A^2 + B^2); |factor| applied once after sqrt.
    ss = gx * gx + gy * gy + 2.0 * (A * A + B * B)
    mag = jnp.sqrt(ss) * abs(float(factor))          # (TB, Ho, Wo)

    # Per-image min/max normalization, as torch: x -= x.min(); x /= x.max().
    # Both reductions are taken on `mag` (max(mag) - min == max(mag - min) up
    # to ~1 ulp) so the two reductions pipeline and the extra full-array
    # subtract pass before the max is gone.  Constant images -> NaN (0/0),
    # identical to the PyTorch module.
    mn = jnp.min(mag, axis=(1, 2), keepdims=True)
    mx = jnp.max(mag, axis=(1, 2), keepdims=True) - mn
    out_ref[...] = ((mag - mn) * pl.reciprocal(mx, approx=False)).astype(out_ref.dtype)


def _vmem_capacity_bytes():
    """Physical VMEM per TensorCore (conservative fallback if unknown)."""
    try:
        cap = getattr(pltpu.get_tpu_info(), "vmem_capacity_bytes", None)
        if cap:
            return int(cap)
    except Exception:
        pass
    try:
        kind = jax.devices()[0].device_kind.lower()
        if any(t in kind for t in ("v5 lite", "v5e", "v5litepod", "v6", "trillium")):
            return 128 * 1024 * 1024
    except Exception:
        pass
    return 64 * 1024 * 1024   # conservative: v7x per-TC VMEM


def _vmem_plan():
    """(per-step working-set budget, vmem_limit_bytes, min grid steps, hard cap)."""
    cap = _vmem_capacity_bytes()
    if cap >= 128 * 1024 * 1024:
        # v5e / v6e: 128 MiB physical VMEM, single TensorCore.  Big tiles,
        # only a modest >=3-step floor for pipelining on large batches.
        budget, vmem_limit, min_steps = 32 << 20, 64 << 20, 3
    else:
        # v7x: 64 MiB per TensorCore.  Keep tiles modest and target >= 4 grid
        # steps so dimension_semantics=("parallel",) shards across both TCs.
        budget, vmem_limit, min_steps = 12 << 20, 44 << 20, 4
    hard_cap = int(cap * 0.85)    # headroom for compiler-internal scratch
    return budget, vmem_limit, min_steps, hard_cap


def _per_image_vmem_bytes(h, w, ho, wo, in_itemsize, out_itemsize):
    """Rough peak VMEM per image after the slice-relayout fix."""
    return (2 * in_itemsize * h * w          # double-buffered input block
            + 4 * h * w                      # f32 cast of the tile
            + 4 * 4 * h * wo                 # col1, col2, hsum, hdiff
            + 4 * 12 * ho * wo               # stencil + normalization temps
            + 2 * out_itemsize * ho * wo)    # double-buffered output block


def _choose_batch_block(n, per_img_bytes, budget_bytes, min_steps, cap=4096):
    """Largest divisor of n that fits the VMEM budget and keeps >= min_steps
    grid steps (so pipelining / v7x megacore sharding have work to split)."""
    steps_cap = max(1, n // max(1, min(min_steps, n)))
    fit_cap = max(1, budget_bytes // max(per_img_bytes, 1))
    target = int(min(n, cap, fit_cap, steps_cap))
    for tb in range(target, 0, -1):
        if n % tb == 0:
            return tb
    return 1


def sobel_magnitude_normalized(img, factor: float = 2.0, out_dtype=None):
    """Pallas kernel: per-image min/max-normalized Sobel magnitude map.

    img: (N, 1, H, W) float (f32/bf16/f16)  ->  (N, H-2, W-2) `out_dtype`
    (default float32; pass bf16 on v5e if downstream tolerates it).
    """
    n, c, h, w = img.shape
    if c != 1:
        raise ValueError("Sobel: Conv2d(in_channels=1) requires img.shape[1] == 1")
    if h < 3 or w < 3:
        raise ValueError("Sobel: 3x3 VALID conv requires H >= 3 and W >= 3")
    if not jnp.issubdtype(img.dtype, jnp.floating):
        img = img.astype(jnp.float32)            # integer inputs: cast once
    if out_dtype is None:
        out_dtype = jnp.float32

    ho, wo = h - 2, w - 2
    budget, vmem_limit, min_steps, hard_cap = _vmem_plan()
    per_img = _per_image_vmem_bytes(h, w, ho, wo,
                                    np.dtype(img.dtype).itemsize,
                                    np.dtype(out_dtype).itemsize)
    tb = _choose_batch_block(n, per_img, budget, min_steps)

    needed = tb * per_img + (6 << 20)
    if needed > vmem_limit:
        if needed > hard_cap:
            # TODO(synk): add a row-tiled (2-row halo) grid axis with a running
            # per-image min/max carry for images whose working set exceeds VMEM.
            raise ValueError(
                f"Sobel: a single {h}x{w} image needs ~{needed >> 20} MiB VMEM, "
                f"exceeding this chip's ~{hard_cap >> 20} MiB usable VMEM; "
                "row tiling is not implemented yet.")
        vmem_limit = needed

    kernel = functools.partial(_sobel_kernel, factor=float(factor), Ho=ho, Wo=wo)

    return pl.pallas_call(
        kernel,
        out_shape=jax.ShapeDtypeStruct((n, ho, wo), out_dtype),
        grid=(n // tb,),
        in_specs=[
            # Channel dim squeezed: kernel sees (TB, H, W) directly.
            pl.BlockSpec((tb, None, h, w), lambda b: (b, 0, 0, 0)),
        ],
        out_specs=pl.BlockSpec((tb, ho, wo), lambda b: (b, 0, 0)),
        compiler_params=pltpu.CompilerParams(
            dimension_semantics=("parallel",),
            vmem_limit_bytes=int(vmem_limit),
        ),
    )(img)


def sobel_forward(img, factor: float = 2.0):
    """Exact reproduction of Sobel.forward (minus its debug print() calls)."""
    n, c = img.shape[0], img.shape[1]
    mag = sobel_magnitude_normalized(img, factor)   # conv -> ^2 -> sum -> sqrt -> minmax
    x = mag.reshape(n, -1)                          # nn.Flatten()
    # torch's x.view(img.size(0), img.size(1)) — only shape-valid when
    # (H-2)*(W-2) == C.  Enforce the same constraint.
    if x.shape[1] != c:
        raise ValueError("view(N, C) in the reference requires (H-2)*(W-2) == img.size(1)")
    # Normalization is already applied in-kernel; it is identical to
    # normalizing after the view since the view is a no-op reshape per row.
    return x.reshape(n, c)


def _sobel_magnitude_ref(img, factor: float = 2.0):
    """Pure-JAX reference for the in-kernel compute (correctness check)."""
    G = jnp.asarray(_make_filters(factor), dtype=jnp.float32)    # (4, 3, 3)
    w = G[:, None, :, :]                                         # OIHW
    y = jax.lax.conv_general_dilated(
        img.astype(jnp.float32), w, window_strides=(1, 1), padding="VALID",
        dimension_numbers=("NCHW", "OIHW", "NCHW"))
    m = jnp.sqrt(jnp.sum(y * y, axis=1))                         # (N, Ho, Wo)
    m = m - jnp.min(m, axis=(1, 2), keepdims=True)
    m = m / jnp.max(m, axis=(1, 2), keepdims=True)
    return m


if __name__ == "__main__":
    key = jax.random.PRNGKey(0)
    k1, k2, k3 = jax.random.split(key, 3)

    # 1) Batched, non-square f32 image vs pure-JAX reference.
    img1 = jax.random.uniform(k1, (4, 1, 10, 18), dtype=jnp.float32)
    got1 = sobel_magnitude_normalized(img1)
    want1 = _sobel_magnitude_ref(img1)
    np.testing.assert_allclose(np.asarray(got1), np.asarray(want1),
                               rtol=1e-5, atol=1e-5)

    # 2) bf16 input: cast happens inside the kernel; arithmetic stays f32.
    img2 = jax.random.uniform(k2, (2, 1, 16, 24), dtype=jnp.float32).astype(jnp.bfloat16)
    got2 = sobel_magnitude_normalized(img2)
    want2 = _sobel_magnitude_ref(img2.astype(jnp.float32))
    np.testing.assert_allclose(np.asarray(got2), np.asarray(want2),
                               rtol=1e-5, atol=1e-5)

    # 3) Exact reference forward.  The reference's final view(N, C) is only
    #    shape-valid for 3x3 grayscale inputs ((H-2)*(W-2) == C == 1); with a
    #    single element per row the 0/0 normalization yields NaN, exactly as
    #    the PyTorch module does.
    img3 = jax.random.uniform(k3, (4, 1, 3, 3), dtype=jnp.float32)
    out = sobel_forward(img3)
    jax.block_until_ready(out)
    assert out.shape == (4, 1)
    assert out.dtype == jnp.float32

    print("KERNEL_OK")
</pallas_src>

<mosaic_0001>
module attributes {stable_mosaic.version = 11 : i64} {
  func.func @_sobel_kernel(%arg0: i32, %arg1: memref<1x1x10x18xf32, #tpu.memory_space<vmem>>, %arg2: memref<1x8x16xf32, #tpu.memory_space<vmem>>) attributes {dimension_semantics = [#tpu.dimension_semantics<parallel>], iteration_bounds = array<i64: 4>, scalar_prefetch = 0 : i64, scratch_operands = 0 : i64, tpu.core_type = #tpu.core_type<tc>, window_params = [{transform_indices = @transform_0, window_bounds = array<i64: 1, 1, 10, 18>}, {transform_indices = @transform_1, window_bounds = array<i64: 1, 8, 16>}]} {
    %c0 = arith.constant 0 : index
    %c0_0 = arith.constant 0 : index
    %c0_1 = arith.constant 0 : index
    %c0_2 = arith.constant 0 : index
    %0 = vector.load %arg1[%c0, %c0_0, %c0_1, %c0_2] : memref<1x1x10x18xf32, #tpu.memory_space<vmem>>, vector<1x1x10x18xf32>
    %1 = vector.shape_cast %0 : vector<1x1x10x18xf32> to vector<1x10x18xf32>
    %2 = vector.extract_strided_slice %1 {offsets = [0, 0, 0], sizes = [1, 10, 16], strides = [1, 1, 1]} : vector<1x10x18xf32> to vector<1x10x16xf32>
    %3 = vector.extract_strided_slice %1 {offsets = [0, 0, 1], sizes = [1, 10, 16], strides = [1, 1, 1]} : vector<1x10x18xf32> to vector<1x10x16xf32>
    %4 = vector.extract_strided_slice %1 {offsets = [0, 0, 2], sizes = [1, 10, 16], strides = [1, 1, 1]} : vector<1x10x18xf32> to vector<1x10x16xf32>
    %5 = arith.addf %2, %3 : vector<1x10x16xf32>
    %6 = arith.addf %5, %4 : vector<1x10x16xf32>
    %7 = arith.subf %2, %4 : vector<1x10x16xf32>
    %8 = vector.extract_strided_slice %6 {offsets = [0, 0, 0], sizes = [1, 8, 16], strides = [1, 1, 1]} : vector<1x10x16xf32> to vector<1x8x16xf32>
    %9 = vector.extract_strided_slice %6 {offsets = [0, 2, 0], sizes = [1, 8, 16], strides = [1, 1, 1]} : vector<1x10x16xf32> to vector<1x8x16xf32>
    %10 = vector.extract_strided_slice %7 {offsets = [0, 0, 0], sizes = [1, 8, 16], strides = [1, 1, 1]} : vector<1x10x16xf32> to vector<1x8x16xf32>
    %11 = vector.extract_strided_slice %7 {offsets = [0, 1, 0], sizes = [1, 8, 16], strides = [1, 1, 1]} : vector<1x10x16xf32> to vector<1x8x16xf32>
    %12 = vector.extract_strided_slice %7 {offsets = [0, 2, 0], sizes = [1, 8, 16], strides = [1, 1, 1]} : vector<1x10x16xf32> to vector<1x8x16xf32>
    %13 = vector.extract_strided_slice %3 {offsets = [0, 0, 0], sizes = [1, 8, 16], strides = [1, 1, 1]} : vector<1x10x16xf32> to vector<1x8x16xf32>
    %14 = vector.extract_strided_slice %3 {offsets = [0, 2, 0], sizes = [1, 8, 16], strides = [1, 1, 1]} : vector<1x10x16xf32> to vector<1x8x16xf32>
    %15 = arith.subf %13, %14 : vector<1x8x16xf32>
    %16 = arith.subf %8, %9 : vector<1x8x16xf32>
    %17 = arith.addf %10, %11 : vector<1x8x16xf32>
    %18 = arith.addf %17, %12 : vector<1x8x16xf32>
    %19 = arith.addf %18, %11 : vector<1x8x16xf32>
    %20 = arith.addf %16, %15 : vector<1x8x16xf32>
    %21 = arith.mulf %19, %19 : vector<1x8x16xf32>
    %22 = arith.mulf %20, %20 : vector<1x8x16xf32>
    %23 = arith.addf %21, %22 : vector<1x8x16xf32>
    %24 = arith.mulf %16, %16 : vector<1x8x16xf32>
    %25 = arith.mulf %18, %18 : vector<1x8x16xf32>
    %26 = arith.addf %24, %25 : vector<1x8x16xf32>
    %cst = arith.constant 2.000000e+00 : f32
    %27 = vector.broadcast %cst : f32 to vector<1x8x16xf32>
    %28 = arith.mulf %27, %26 : vector<1x8x16xf32>
    %29 = arith.addf %23, %28 : vector<1x8x16xf32>
    %30 = math.sqrt %29 : vector<1x8x16xf32>
    %cst_3 = arith.constant 2.000000e+00 : f32
    %31 = vector.broadcast %cst_3 : f32 to vector<1x8x16xf32>
    %32 = arith.mulf %30, %31 : vector<1x8x16xf32>
    %cst_4 = arith.constant dense<0x7F800000> : vector<1xf32>
    %33 = vector.multi_reduction <minimumf>, %32, %cst_4 [1, 2] : vector<1x8x16xf32> to vector<1xf32>
    %34 = vector.shape_cast %33 : vector<1xf32> to vector<1x1x1xf32>
    %cst_5 = arith.constant dense<0xFF800000> : vector<1xf32>
    %35 = vector.multi_reduction <maximumf>, %32, %cst_5 [1, 2] : vector<1x8x16xf32> to vector<1xf32>
    %36 = vector.shape_cast %35 : vector<1xf32> to vector<1x1x1xf32>
    %37 = arith.subf %36, %34 : vector<1x1x1xf32>
    %38 = vector.broadcast %34 : vector<1x1x1xf32> to vector<1x8x16xf32>
    %39 = arith.subf %32, %38 : vector<1x8x16xf32>
    %40 = tpu.reciprocal %37 : vector<1x1x1xf32> -> vector<1x1x1xf32>
    %41 = vector.broadcast %40 : vector<1x1x1xf32> to vector<1x8x16xf32>
    %42 = arith.mulf %39, %41 : vector<1x8x16xf32>
    %c0_6 = arith.constant 0 : index
    %c0_7 = arith.constant 0 : index
    %c0_8 = arith.constant 0 : index
    %43 = vector.load %arg2[%c0_6, %c0_7, %c0_8] : memref<1x8x16xf32, #tpu.memory_space<vmem>>, vector<1x8x16xf32>
    tpu.vector_store %arg2[%c0_6, %c0_7, %c0_8], %42 {strides = array<i32>} : memref<1x8x16xf32, #tpu.memory_space<vmem>>, vector<1x8x16xf32>,
    return
  }
  func.func @transform_0(%arg0: i32) -> (i32, i32, i32, i32) {
    %c0_i32 = arith.constant 0 : i32
    %c0_i32_0 = arith.constant 0 : i32
    %c0_i32_1 = arith.constant 0 : i32
    %c0_i32_2 = arith.constant 0 : i32
    return %arg0, %c0_i32, %c0_i32_0, %c0_i32_1 : i32, i32, i32, i32
  }
  func.func @transform_1(%arg0: i32) -> (i32, i32, i32) {
    %c0_i32 = arith.constant 0 : i32
    %c0_i32_0 = arith.constant 0 : i32
    %c0_i32_1 = arith.constant 0 : i32
    return %arg0, %c0_i32, %c0_i32_0 : i32, i32, i32
  }
}

</mosaic_0001>

<bundles_post_ra>
// kernel: tpu_custom_call.1
= control target key start
LH: loop header
LB: loop body
LE: loop exit
PB: predicated region body
PF: predicated region fallthrough
CT: control target
= control target key end

     0   :  { %6 = vsyncpa [#allocation3], 0  ;;  %s522_s0 = inlined_call_operand.vmem [shape: f32[4,1,10,18], index: 0, kind: input, shape index: {}]   ;;  %s523_s1 = inlined_call_operand.hbm [shape: f32[4,8,16], index: 1, kind: output, shape index: {}]  }
   0x1   :  { %8 = vsyncpa [#allocation3 + $0x1], 0  ;;  %s416_s6 = smov 0   ;;  %s418_s7 = smov 0  }
   0x2   :  { %s420_s8 = smov 0   ;;  %s422_s9 = smov 0  }
   0x3 LB: > { %s437_s10 = sadd.s32 4294967295, %s401_s9   ;;  %s282_s11 = sadd.s32 4294967294, %s401_s9   ;;  %s401_s9 = sphi %s422_s9, %s529_s9   ;;  %s397_s8 = sphi %s420_s8, %s528_s8   ;;  %s393_s7 = sphi %s418_s7, %s527_s7   ;;  %s389_s6 = sphi %s416_s6, %s526_s6  }
   0x4   : > { %s441_s12 = sadd.s32 1, %s401_s9   ;;  %s47_s13 = sadd.s32 1, %s397_s8 }
   0x5   : > { %s44_s14 = ssub.s32 %s401_s9, %s441_s12  ;;  %p57_p0 = scmp.ne.s32.totalorder %s397_s8, %s393_s7 }
   0x6   : > { %p45_p1 = scmp.eq.s32.totalorder %s44_s14, 0  ;;  %p58_p2 = scmp.eq.s32.totalorder %s437_s10, 3 }
   0x7   : > { %p63_p3 = scmp.ne.s32.totalorder %s393_s7, %s389_s6  ;;  %p64_p4 = scmp.eq.s32.totalorder %s282_s11, 3 }
   0x8   : > { %s452_s15 = scalar_select %p45_p1, %s397_s8, %s47_s13  }
   0x9   : > { %p454_p5 = por %p58_p2, %p57_p0  ;;  %p458_p6 = por %p64_p4, %p63_p3 }
   0xa   : > { %p285_p7 = scmp.ge.s32.totalorder %s401_s9, 1  ;;  %p90_p8 = scmp.lt.s32.totalorder %s401_s9, 5 }
   0xc   : > { %p91_p9 = pnand %p285_p7, %p90_p8 }
   0xd   : > { %p110_p10 = scmp.lt.s32.totalorder (!%p91_p9), %s437_s10, 3  ;;  %vm137_vm0 = vcmask (!%p91_p9), 1045504   ;;  %s403_s23 = smov (!%p91_p9), 126   ;;  %vm152_vm1 = vcmask (!%p91_p9), 1046528   ;;  %vm185_vm4 = vcmask (!%p91_p9), 130048  }
   0xe   : > { %94 = sbr.rel (%p91_p9) target bundleno = 363 (0x16b), region = 24  ;;  %s404_s24 = smov (!%p91_p9), 127  }
   0xf   : > { %s107_s25 = sand.u32 (!%p91_p9), 1, %s393_s7   ;;  %s290_s27 = sshll.u32 (!%p91_p9), %s437_s10, 7 }
  0x10   : > { %s286_s26 = sshll.u32 (!%p91_p9), %s107_s25, 3  ;;  %s479_s3 = scalar_lea.hbm (!%p91_p9), %s523_s1, %s290_s27 }
  0x11   : > { %s109_s28 = scalar_lea.vmem (!%p91_p9), [#allocation2], %s286_s26  ;;  %s210_s4 = scalar_lea.sflag (!%p91_p9), [#allocation3], %s107_s25 }
  0x12   : > { %s223_s29 = sshll.u32 (!%p91_p9), %s109_s28, 4  ;;  %s481_s29 = int_to_ptr.vmem [resolvable:$true] %s223_s29 }
  0x13   : > { %s339_s5 = scalar_lea.vmem (!%p91_p9), %s481_s29, 128 }
  0x14   : > { %p340_p11 = scmp.ne.s32.totalorder (!%p91_p9), %s481_s29, %s339_s5 }
  0x15   : > { %s111_s18 = scalar_select %p110_p10, %s437_s10, 3 }
  0x16   : > { %p341_p12 = pnand %p340_p11, %p454_p5  ;;  %s405_s10 = smov [#allocation2]  }
  0x17   : > { %s293_s19 = sshll.u32 %s111_s18, 4  ;;  %s343_s11 = sshll.u32 %s405_s10, 4  ;;  %s344_s11 = int_to_ptr.vmem [resolvable:$false] %s343_s11 }
  0x18   : > { %s114_s22 = scalar_lea.vmem %s522_s0, %s293_s19  ;;  %p342_p13 = pneg %p341_p12 }
  0x19   : > { %v115_v0 = vld [vmem:[%s114_s22] sm:$0xff]  ;;  %v116_v1 = vld [vmem:[%s114_s22 + $0x8] sm:$0x3]  ;;  %s345_s13 = scalar_lea.vmem %s344_s11, 256  ;;  %p346_p0 = scmp.lt.s32.totalorder %s481_s29, %s344_s11 }
  0x1a   : > { %127 = vrot.lane.b32.xlu1 %v115_v0, %s403_s23  ;;  %119 = vrot.lane.b32.xlu0 %v115_v0, %s404_s24  ;;  %v138_v2 = vrot.slane %v115_v0, 2  ;;  %v139_v3 = vrot.slane %v116_v1, 2  ;;  %p347_p1 = scmp.lt.s32.totalorder %s345_s13, %s339_s5 }
  0x1c   : > { %v140_v4 = vsel %vm137_vm0, %v138_v2, %v139_v3  ;;  %p348_p2 = por %p347_p1, %p346_p0 }
  0x1d   : > { %v142_v5 = vsub.f32 %v115_v0, %v140_v4 }
  0x1e   : > { %129 = vrot.lane.b32.xlu1 %v116_v1, %s403_s23  ;;  %121 = vrot.lane.b32.xlu0 %v116_v1, %s404_s24  ;;  %p349_p3 = pnand %p348_p2, %p342_p13 }
  0x22   : > { %165 = vrot.lane.b32.xlu0 %v142_v5, %s404_s24 }
  0x8c   : > { %v128_v6 = vpop.permute.xlu1 %127  ;;  %v120_v7 = vpop.permute.xlu0 %119 }
  0x8d   : > { %v125_v8 = vadd.f32 %v120_v7, %v115_v0  ;;  %v135_v9 = vsub.f32 %v115_v0, %v128_v6 }
  0x8f   : > { %v133_v12 = vadd.f32 %v128_v6, %v125_v8  ;;  %v153_v15 = vrot.slane %v135_v9, 1  ;;  %v158_v19 = vrot.slane %v135_v9, 2 }
  0x90   : > { %v130_v10 = vpop.permute.xlu1 %129  ;;  %v122_v11 = vpop.permute.xlu0 %121 }
  0x91   : > { %v136_v13 = vsub.f32 %v116_v1, %v130_v10  ;;  %v126_v14 = vadd.f32 %v122_v11, %v116_v1  ;;  %v145_v20 = vrot.slane %v133_v12, 2 }
  0x93   : > { %v154_v16 = vrot.slane %v136_v13, 1  ;;  %v159_v17 = vrot.slane %v136_v13, 2  ;;  %v134_v18 = vadd.f32 %v130_v10, %v126_v14 }
  0x94   : > { %v166_v26 = vpop.permute.xlu0 %165 }
  0x95   : > { %v146_v21 = vrot.slane %v134_v18, 2  ;;  %v155_v22 = vsel %vm152_vm1, %v153_v15, %v154_v16  ;;  %v160_v24 = vsel %vm137_vm0, %v158_v19, %v159_v17 }
  0x96   : > { %v157_v23 = vadd.f32 %v155_v22, %v135_v9 }
  0x97   : > { %v147_v25 = vsel %vm137_vm0, %v145_v20, %v146_v21 }
  0x98   : > { %v149_v27 = vsub.f32 %v133_v12, %v147_v25  ;;  %v162_v28 = vadd.f32 %v160_v24, %v157_v23 }
  0x9a   : > { %v163_v29 = vadd.f32 %v162_v28, %v155_v22  ;;  %v172_v30 = vmul.f32 %v149_v27, %v149_v27  ;;  %v173_v31 = vmul.f32 %v162_v28, %v162_v28  ;;  %v168_v32 = vadd.f32 %v166_v26, %v149_v27 }
  0x9c   : > { %v169_v33 = vmul.f32 %v163_v29, %v163_v29  ;;  %v174_v34 = vadd.f32 %v173_v31, %v172_v30  ;;  %v170_v35 = vmul.f32 %v168_v32, %v168_v32 }
  0x9e   : > { %v175_v36 = vmul.f32 2.0, %v174_v34  ;;  %v171_v37 = vadd.f32 %v170_v35, %v169_v33 }
  0xa0   : > { %v176_v38 = vadd.f32 %v175_v36, %v171_v37 }
  0xa2   : > { %335 = vrsqrt.f32 %v176_v38  ;;  %vm179_vm2 = vcmp.eq.f32.partialorder %v176_v38, inf  ;;  %v182_v41 = vand.u32 2147483648, %v176_v38  ;;  %vm181_vm3 = vcmp.eq.f32.partialorder %v176_v38, 0.0 }
  0xac   : > { %v336_v39 = vpop.eup %335 }
  0xad   : > { %v178_v40 = vmul.f32 %v336_v39, %v176_v38 }
  0xaf   : > { %v180_v42 = vsel %vm179_vm2, %v176_v38, %v178_v40 }
  0xb0   : > { %v183_v43 = vsel %vm181_vm3, %v182_v41, %v180_v42 }
  0xb1   : > { %v184_v44 = vmul.f32 2.0, %v183_v43 }
  0xb3   : > { %v195_v45 = vsel %vm185_vm4, %v184_v44, -inf  ;;  %v186_v46 = vsel %vm185_vm4, %v184_v44, inf }
  0xb4   : > { %196 = vmax.xlane.f32.xlu0 %v195_v45  ;;  %187 = vmin.xlane.f32.xlu1 %v186_v46 }
 0x141   : > { %v197_v47 = vpop.xlane.xlu0 %196  ;;  %v188_v48 = vpop.xlane.xlu1 %187 }
 0x142   : > { %v198_v49 = vrot.slane %v197_v47, 4  ;;  %v189_v50 = vrot.slane %v188_v48, 4 }
 0x144   : > { %v199_v51 = vmax.f32 %v197_v47, %v198_v49  ;;  %v190_v52 = vmin.f32 %v188_v48, %v189_v50 }
 0x146   : > { %v200_v53 = vrot.slane %v199_v51, 2  ;;  %v191_v54 = vrot.slane %v190_v52, 2 }
 0x148   : > { %v201_v55 = vmax.f32 %v199_v51, %v200_v53  ;;  %v192_v56 = vmin.f32 %v190_v52, %v191_v54 }
 0x14a   : > { %v202_v57 = vrot.slane %v201_v55, 1  ;;  %v193_v58 = vrot.slane %v192_v56, 1 }
 0x14c   : > { %v203_v59 = vmax.f32 %v201_v55, %v202_v57  ;;  %v194_v60 = vmin.f32 %v192_v56, %v193_v58 }
 0x14e   : > { %v204_v61 = vsub.f32 %v203_v59, %v194_v60  ;;  %v205_v62 = vsub.f32 %v184_v44, %v194_v60 }
 0x150   : > { %337 = vrcp.f32 %v204_v61 }
 0x15a   : > { %v338_v63 = vpop.eup %337 }
 0x15b   : > { %v207_v0 = vmul.f32 %v338_v63, %v205_v62 }
 0x15d   : > { %208 = vst.msk [vmem:[%s109_s28] sm:$0xff] %vm185_vm4, %v207_v0 }
 0x15e   : > { %352 = shalt.err (!%p349_p3)
}
 0x15f   : > { %s353_s14 = scalar_lea.hbm %s479_s3, 128  ;;  %s357_s20 = scalar_lea.hbm %s523_s1, 512 }
 0x160   : > { %p354_p4 = scmp.ne.s32.totalorder %s479_s3, %s353_s14  ;;  %p358_p9 = scmp.lt.u32.totalorder %s479_s3, %s523_s1 }
 0x161   : > { %p359_p10 = scmp.lt.u32.totalorder %s357_s20, %s353_s14  ;;  %p361_p12 = scmp.lt.u32.totalorder %s353_s14, %s479_s3 }
 0x162   : > { %p355_p7 = pnand %p354_p4, %p454_p5 }
 0x163   : > { %p360_p11 = por %p359_p10, %p358_p9 }
 0x164   : > { %p356_p8 = pneg %p355_p7 }
 0x165   : > { %p362_p13 = por %p361_p12, %p360_p11 }
 0x167   : > { %p363_p0 = pnand %p362_p13, %p356_p8 }
 0x169   : > { %366 = shalt.err (!%p363_p0)
}
 0x16a   : > { %294 = dma.vmem_to_hbm [thread:$0]  (%p454_p5), %s481_s29, 128, %s479_s3, %s210_s4  }
 0x16b PF: > { %p300_p1 = scmp.ge.s32.totalorder %s401_s9, 2  ;;  %s235_s23 = sand.u32 1, %s389_s6  }
 0x16c   : > { %s236_s24 = scalar_lea.sflag [#allocation3], %s235_s23 }
 0x16d   : > { %p297_p2 = pnand %p300_p1, %p458_p6 }
 0x16f   : > { %384 = dma.done.wait (!%p297_p2), %s236_s24, 128  }
 0x170   : > { %386 = vsyncadd (!%p297_p2), %s236_s24, 4294967168  ;;  %p11_p3 = scmp.ge.s32.totalorder %s441_s12, 6   ;;  %s526_s6 = smov %s393_s7 }
 0x171   : > { %s527_s7 = smov %s397_s8  ;;  %s528_s8 = smov %s452_s15 }
 0x172   : > { %s529_s9 = smov %s441_s12  ;;  %13 = sbr.rel (!%p11_p3) target bundleno = 3 (0x3), region = 59 }
 0x179   :  { %241 = vsyncpa [#allocation3], 1 }
 0x17a   :  { %243 = vsyncpa [#allocation3 + $0x1], 1 }

</bundles_post_ra>
